<compile_context>
chip_gen: v7x
topology: tpu7x:2x2x1
jax: 0.10.0
libtpu: 0.0.40
codegen_flags: <defaults>
</compile_context>

<pallas_src>
import math

import jax
import jax.numpy as jnp
from jax.experimental import pallas as pl
from jax.experimental.pallas import tpu as pltpu


# -----------------------------------------------------------------------------
# Configuration (synthetic, mirrors Grid_Decoder.__init__ arguments)
# -----------------------------------------------------------------------------
BOUND = [[-1.0, 1.0], [-1.0, 1.0], [-1.0, 1.0]]   # bound
VOXEL_SIZE = 0.1                                  # voxel_size
L = 4                                             # n_levels
F_ENTRY = 2                                       # n_features_per_level
LOG2_T = 10                                       # log2_hashmap_size
B_SCALE = 1.5                                     # per_level_scale
HIDDEN = 64                                       # n_neurons
ENC_DIM = L * F_ENTRY                             # per-head MLP input width (8)
ENC2 = 2 * ENC_DIM                                # fused input width (16)
HID2 = 2 * HIDDEN                                 # fused hidden width (128)
OUT_ROWS = 8                                      # fused output rows (sdf + rgb + pad)
T = 2 ** LOG2_T

TILE_N = 512                                      # points per grid step (lane axis)

# Static (Python-int) resolutions — kept out of the jit pytree on purpose.
_BOUND_DIS = [hi - lo for lo, hi in BOUND]
_MAX_DIS = math.ceil(max(_BOUND_DIS))
N_MIN = int(_MAX_DIS / VOXEL_SIZE)
RESOLUTIONS = tuple(int(N_MIN * (B_SCALE ** lvl)) for lvl in range(L))


# -----------------------------------------------------------------------------
# Pallas kernel: fused sdf-MLP + color-MLP, feature-major (lane = point)
# -----------------------------------------------------------------------------
def _fused_heads_kernel(enc_ref, w0_ref, w1_ref, wf_ref, out_ref):
    enc = enc_ref[...]                                         # (16, TILE_N) bf16

    # layer 1 (both heads, block-diagonal weight), ReLU
    h1 = jnp.dot(w0_ref[...], enc,
                 preferred_element_type=jnp.float32)           # (128, TILE_N) f32
    h1 = jnp.maximum(h1, 0.0).astype(jnp.bfloat16)

    # layer 2: row 0 = sdf output (linear), rows 1..64 = color hidden-2
    h2 = jnp.dot(w1_ref[...], h1,
                 preferred_element_type=jnp.float32)           # (128, TILE_N) f32
    sdf_row = h2[0:1, :]                                       # raw sdf (no activation)
    h2_relu = jnp.maximum(h2, 0.0)                             # f32 epilogue (v5e-safe)

    # layer 3 (color only): small f32 matmul, sigmoid epilogue
    rgb_logits = jnp.dot(wf_ref[...], h2_relu,
                         preferred_element_type=jnp.float32)   # (8, TILE_N) f32
    rgb = jax.nn.sigmoid(rgb_logits)

    # assemble lane-dense output slab: row 0 = sdf, rows 1..3 = rgb, rows 4..7 = 0
    row = jax.lax.broadcasted_iota(jnp.int32, rgb.shape, 0)
    out = jnp.where(row == 0, jnp.broadcast_to(sdf_row, rgb.shape),
                    jnp.where(row <= 3, rgb, 0.0))
    out_ref[...] = out


def _run_fused_heads(enc_t, params):
    """enc_t: (ENC2, n_pad) bf16, n_pad % TILE_N == 0. Returns (8, n_pad) f32."""
    _, n = enc_t.shape
    assert n % TILE_N == 0
    grid = (n // TILE_N,)

    grid_spec = pltpu.PrefetchScalarGridSpec(
        num_scalar_prefetch=0,
        grid=grid,
        in_specs=[
            pl.BlockSpec((ENC2, TILE_N), lambda i: (0, i)),      # enc (tiled on lanes)
            pl.BlockSpec((HID2, ENC2), lambda i: (0, 0)),        # w0 fused^T (bf16)
            pl.BlockSpec((HID2, HID2), lambda i: (0, 0)),        # w1 fused^T (bf16)
            pl.BlockSpec((OUT_ROWS, HID2), lambda i: (0, 0)),    # w_final^T (f32)
        ],
        out_specs=pl.BlockSpec((OUT_ROWS, TILE_N), lambda i: (0, i)),
    )

    return pl.pallas_call(
        _fused_heads_kernel,
        out_shape=jax.ShapeDtypeStruct((OUT_ROWS, n), jnp.float32),
        grid_spec=grid_spec,
        compiler_params=pltpu.CompilerParams(
            dimension_semantics=("parallel",)),
    )(enc_t, params["w0f_t"], params["w1f_t"], params["wf_t"])


# -----------------------------------------------------------------------------
# Hash-grid encoding (tcnn 'Grid/Hash', linear interpolation) -- JAX glue.
# Corner indices + trilinear weights are computed ONCE and reused for both heads
# by gathering a concatenated (sdf|color) table.  Vectorized across all 8 corners
# and all L levels into a SINGLE gather on a flattened (L*T, 2F) table.
# -----------------------------------------------------------------------------
_PRIMES = jnp.array([1, 2654435761, 805459861], dtype=jnp.uint32)
_RES = jnp.array(RESOLUTIONS, dtype=jnp.float32)                       # (L,)
_CORNERS = jnp.array(
    [[(c >> 0) & 1, (c >> 1) & 1, (c >> 2) & 1] for c in range(8)],
    dtype=jnp.int32)                                                    # (8, 3)


def hash_grid_encode_pair(xyz01, table_pair):
    """xyz01: (N,3) in [0,1); table_pair: (L, T, 2*F) with [...,:F]=sdf, [...,F:]=color.
    Returns (enc_sdf (N, L*F), enc_col (N, L*F))."""
    n = xyz01.shape[0]

    pos = xyz01[None, :, :] * _RES[:, None, None]                       # (L, N, 3)
    g0 = jnp.floor(pos).astype(jnp.int32)                               # (L, N, 3)
    frac = pos - g0.astype(jnp.float32)                                 # (L, N, 3)

    corner = (g0[None] + _CORNERS[:, None, None, :]).astype(jnp.uint32)  # (8, L, N, 3)
    h = corner * _PRIMES                                                 # (8, L, N, 3)
    idx = (h[..., 0] ^ h[..., 1] ^ h[..., 2]) % jnp.uint32(T)            # (8, L, N)

    w = jnp.prod(
        jnp.where(_CORNERS[:, None, None, :] == 1, frac[None], 1.0 - frac[None]),
        axis=-1)                                                          # (8, L, N)

    lvl_off = (jnp.arange(L, dtype=jnp.uint32) * jnp.uint32(T))[None, :, None]
    flat_idx = (idx + lvl_off).astype(jnp.int32)                          # (8, L, N)
    table_flat = table_pair.reshape(L * T, 2 * F_ENTRY)
    gathered = jnp.take(table_flat, flat_idx.reshape(-1), axis=0)
    gathered = gathered.reshape(8, L, n, 2 * F_ENTRY)

    feats = jnp.sum(w[..., None] * gathered, axis=0)                      # (L, N, 2F)

    enc_sdf = jnp.transpose(feats[..., :F_ENTRY], (1, 0, 2)).reshape(n, L * F_ENTRY)
    enc_col = jnp.transpose(feats[..., F_ENTRY:], (1, 0, 2)).reshape(n, L * F_ENTRY)
    return enc_sdf, enc_col


# -----------------------------------------------------------------------------
# Parameters
# -----------------------------------------------------------------------------
def make_params(key):
    bound = jnp.asarray(BOUND, jnp.float32)               # (3, 2)
    bound_dis = bound[:, 1] - bound[:, 0]

    ks = jax.random.split(key, 7)
    scale = 0.1
    table_sdf = jax.random.uniform(ks[0], (L, T, F_ENTRY), jnp.float32, -1e-1, 1e-1)
    table_col = jax.random.uniform(ks[1], (L, T, F_ENTRY), jnp.float32, -1e-1, 1e-1)

    w0_sdf = scale * jax.random.normal(ks[2], (ENC_DIM, HIDDEN), jnp.float32)
    w1_sdf = scale * jax.random.normal(ks[3], (HIDDEN, 1), jnp.float32)
    w0_col = scale * jax.random.normal(ks[4], (ENC_DIM, HIDDEN), jnp.float32)
    w1_col = scale * jax.random.normal(ks[5], (HIDDEN, HIDDEN), jnp.float32)
    w2_col = scale * jax.random.normal(ks[6], (HIDDEN, 3), jnp.float32)

    # Fused block-diagonal weights, stored transposed for the feature-major kernel.
    w0f = jnp.zeros((ENC2, HID2), jnp.float32)
    w0f = w0f.at[:ENC_DIM, :HIDDEN].set(w0_sdf)
    w0f = w0f.at[ENC_DIM:, HIDDEN:].set(w0_col)

    w1f = jnp.zeros((HID2, HID2), jnp.float32)
    w1f = w1f.at[:HIDDEN, 0].set(w1_sdf[:, 0])             # sdf output (row 0 of h2)
    w1f = w1f.at[HIDDEN:, 1:1 + HIDDEN].set(w1_col)        # color hidden-2 (rows 1..64)

    wf = jnp.zeros((HID2, OUT_ROWS), jnp.float32)
    wf = wf.at[1:1 + HIDDEN, 1:4].set(w2_col)              # rgb (rows 1..3 of output)

    return {
        "bound": bound,
        "bound_dis": bound_dis,
        "table_pair": jnp.concatenate([table_sdf, table_col], axis=-1),  # (L, T, 2F)
        "w0f_t": w0f.T.astype(jnp.bfloat16),               # (128, 16)
        "w1f_t": w1f.T.astype(jnp.bfloat16),               # (128, 128)
        "wf_t": wf.T.astype(jnp.float32),                  # (8, 128)
    }


# -----------------------------------------------------------------------------
# Grid_Decoder forward
# -----------------------------------------------------------------------------
@jax.jit
def grid_decoder_forward(xyz, params):
    """Equivalent of Grid_Decoder.forward: returns {'color': (N,3), 'sdf': (N,)}."""
    n = xyz.shape[0]

    # bound normalization (matches get_values); clamp to avoid boundary hash aliasing
    xyz01 = (xyz - params["bound"][:, 0]) / params["bound_dis"]
    xyz01 = jnp.clip(xyz01, 0.0, 1.0 - 1e-6)

    # shared hash-grid encoding for both heads (single fused gather)
    enc_sdf, enc_col = hash_grid_encode_pair(xyz01, params["table_pair"])
    enc = jnp.concatenate([enc_sdf, enc_col], axis=-1)     # (N, 16)

    # pad points to a multiple of TILE_N, transpose to feature-major, cast to bf16
    n_pad = ((n + TILE_N - 1) // TILE_N) * TILE_N
    if n_pad != n:
        enc = jnp.pad(enc, ((0, n_pad - n), (0, 0)))
    enc_t = enc.T.astype(jnp.bfloat16)                     # (16, n_pad)

    out_t = _run_fused_heads(enc_t, params)                # (8, n_pad) f32
    sdf = out_t[0, :n]
    rgb = out_t[1:4, :n].T
    return {"color": rgb, "sdf": sdf}


if __name__ == "__main__":
    key = jax.random.PRNGKey(0)
    k_param, k_xyz = jax.random.split(key)

    params = make_params(k_param)

    N = 1024  # query points: 2 grid steps of TILE_N=512 (keeps both v7x TCs busy)
    xyz = jax.random.uniform(k_xyz, (N, 3), jnp.float32, -1.0, 1.0)

    out = grid_decoder_forward(xyz, params)
    jax.block_until_ready(out)

    assert out["color"].shape == (N, 3)
    assert out["sdf"].shape == (N,)
    assert jnp.all(jnp.isfinite(out["color"]))
    assert jnp.all(jnp.isfinite(out["sdf"]))
    assert jnp.all((out["color"] >= 0.0) & (out["color"] <= 1.0))
    print("KERNEL_OK")
</pallas_src>

<mosaic_0001>
module attributes {stable_mosaic.version = 11 : i64} {
  func.func @_fused_heads_kernel(%arg0: i32, %arg1: memref<16x512xbf16, #tpu.memory_space<vmem>>, %arg2: memref<128x16xbf16, #tpu.memory_space<vmem>>, %arg3: memref<128x128xbf16, #tpu.memory_space<vmem>>, %arg4: memref<8x128xf32, #tpu.memory_space<vmem>>, %arg5: memref<8x512xf32, #tpu.memory_space<vmem>>) attributes {dimension_semantics = [#tpu.dimension_semantics<parallel>], iteration_bounds = array<i64: 2>, scalar_prefetch = 0 : i64, scratch_operands = 0 : i64, tpu.core_type = #tpu.core_type<tc>, window_params = [{transform_indices = @transform_0, window_bounds = array<i64: 16, 512>}, {pipeline_mode = #tpu.pipeline_mode<synchronous>, transform_indices = @transform_1, window_bounds = array<i64: 128, 16>}, {pipeline_mode = #tpu.pipeline_mode<synchronous>, transform_indices = @transform_2, window_bounds = array<i64: 128, 128>}, {pipeline_mode = #tpu.pipeline_mode<synchronous>, transform_indices = @transform_3, window_bounds = array<i64: 8, 128>}, {transform_indices = @transform_4, window_bounds = array<i64: 8, 512>}]} {
    %c0 = arith.constant 0 : index
    %c0_0 = arith.constant 0 : index
    %0 = vector.load %arg1[%c0, %c0_0] : memref<16x512xbf16, #tpu.memory_space<vmem>>, vector<16x512xbf16>
    %c0_1 = arith.constant 0 : index
    %c0_2 = arith.constant 0 : index
    %1 = vector.load %arg2[%c0_1, %c0_2] : memref<128x16xbf16, #tpu.memory_space<vmem>>, vector<128x16xbf16>
    %cst = arith.constant dense<0.000000e+00> : vector<128x512xf32>
    %2 = tpu.matmul %1, %0, %cst {dimension_numbers = #tpu.dot_dimension_numbers<[1], [0], [0], [1], [0, 0, 1, 1], [], []>} : vector<128x16xbf16>, vector<16x512xbf16>, vector<128x512xf32> -> vector<128x512xf32>
    %cst_3 = arith.constant 0.000000e+00 : f32
    %3 = vector.broadcast %cst_3 : f32 to vector<128x512xf32>
    %4 = arith.maximumf %2, %3 : vector<128x512xf32>
    %5 = arith.truncf %4 : vector<128x512xf32> to vector<128x512xbf16>
    %c0_4 = arith.constant 0 : index
    %c0_5 = arith.constant 0 : index
    %6 = vector.load %arg3[%c0_4, %c0_5] : memref<128x128xbf16, #tpu.memory_space<vmem>>, vector<128x128xbf16>
    %cst_6 = arith.constant dense<0.000000e+00> : vector<128x512xf32>
    %7 = tpu.matmul %6, %5, %cst_6 {dimension_numbers = #tpu.dot_dimension_numbers<[1], [0], [0], [1], [0, 0, 1, 1], [], []>} : vector<128x128xbf16>, vector<128x512xbf16>, vector<128x512xf32> -> vector<128x512xf32>
    %8 = vector.extract_strided_slice %7 {offsets = [0, 0], sizes = [1, 512], strides = [1, 1]} : vector<128x512xf32> to vector<1x512xf32>
    %cst_7 = arith.constant 0.000000e+00 : f32
    %9 = vector.broadcast %cst_7 : f32 to vector<128x512xf32>
    %10 = arith.maximumf %7, %9 : vector<128x512xf32>
    %c0_8 = arith.constant 0 : index
    %c0_9 = arith.constant 0 : index
    %11 = vector.load %arg4[%c0_8, %c0_9] : memref<8x128xf32, #tpu.memory_space<vmem>>, vector<8x128xf32>
    %cst_10 = arith.constant dense<0.000000e+00> : vector<8x512xf32>
    %12 = tpu.matmul %11, %10, %cst_10 {dimension_numbers = #tpu.dot_dimension_numbers<[1], [0], [0], [1], [0, 0, 1, 1], [], []>} : vector<8x128xf32>, vector<128x512xf32>, vector<8x512xf32> -> vector<8x512xf32>
    %13 = arith.negf %12 : vector<8x512xf32>
    %14 = math.exp %13 : vector<8x512xf32>
    %cst_11 = arith.constant 1.000000e+00 : f32
    %15 = vector.broadcast %cst_11 : f32 to vector<8x512xf32>
    %16 = arith.addf %15, %14 : vector<8x512xf32>
    %17 = arith.divf %15, %16 : vector<8x512xf32>
    %18 = tpu.iota {dimensions = array<i32: 0>} : vector<8x512xi32>
    %c0_i32 = arith.constant 0 : i32
    %19 = vector.broadcast %c0_i32 : i32 to vector<8x512xi32>
    %20 = arith.cmpi eq, %18, %19 : vector<8x512xi32>
    %21 = vector.shape_cast %8 : vector<1x512xf32> to vector<1x512xf32>
    %22 = vector.broadcast %21 : vector<1x512xf32> to vector<8x512xf32>
    %c3_i32 = arith.constant 3 : i32
    %23 = vector.broadcast %c3_i32 : i32 to vector<8x512xi32>
    %24 = arith.cmpi sle, %18, %23 : vector<8x512xi32>
    %cst_12 = arith.constant 0.000000e+00 : f32
    %25 = vector.broadcast %cst_12 : f32 to vector<8x512xf32>
    %26 = arith.select %24, %17, %25 : vector<8x512xi1>, vector<8x512xf32>
    %27 = arith.select %20, %22, %26 : vector<8x512xi1>, vector<8x512xf32>
    %c0_13 = arith.constant 0 : index
    %c0_14 = arith.constant 0 : index
    %28 = vector.load %arg5[%c0_13, %c0_14] : memref<8x512xf32, #tpu.memory_space<vmem>>, vector<8x512xf32>
    tpu.vector_store %arg5[%c0_13, %c0_14], %27 {strides = array<i32>} : memref<8x512xf32, #tpu.memory_space<vmem>>, vector<8x512xf32>,
    return
  }
  func.func @transform_0(%arg0: i32) -> (i32, i32) {
    %c0_i32 = arith.constant 0 : i32
    %c0_i32_0 = arith.constant 0 : i32
    return %c0_i32, %arg0 : i32, i32
  }
  func.func @transform_1(%arg0: i32) -> (i32, i32) {
    %c0_i32 = arith.constant 0 : i32
    %c0_i32_0 = arith.constant 0 : i32
    %c0_i32_1 = arith.constant 0 : i32
    return %c0_i32, %c0_i32_0 : i32, i32
  }
  func.func @transform_2(%arg0: i32) -> (i32, i32) {
    %c0_i32 = arith.constant 0 : i32
    %c0_i32_0 = arith.constant 0 : i32
    %c0_i32_1 = arith.constant 0 : i32
    return %c0_i32, %c0_i32_0 : i32, i32
  }
  func.func @transform_3(%arg0: i32) -> (i32, i32) {
    %c0_i32 = arith.constant 0 : i32
    %c0_i32_0 = arith.constant 0 : i32
    %c0_i32_1 = arith.constant 0 : i32
    return %c0_i32, %c0_i32_0 : i32, i32
  }
  func.func @transform_4(%arg0: i32) -> (i32, i32) {
    %c0_i32 = arith.constant 0 : i32
    %c0_i32_0 = arith.constant 0 : i32
    return %c0_i32, %arg0 : i32, i32
  }
}

</mosaic_0001>

<bundles_post_ra>
// kernel: grid_decoder_forward.1
= control target key start
LH: loop header
LB: loop body
LE: loop exit
PB: predicated region body
PF: predicated region fallthrough
CT: control target
= control target key end

     0   :  { %s1502_s15 = smov 0   ;;  %s1504_s16 = smov 0   ;;  %s1677_s0 = inlined_call_operand.vmem [shape: bf16[16,1024], index: 0, kind: input, shape index: {}]   ;;  %s1678_s1 = inlined_call_operand.vmem [shape: bf16[128,16], index: 1, kind: input, shape index: {}]   ;;  %s1679_s2 = inlined_call_operand.vmem [shape: bf16[128,128], index: 2, kind: input, shape index: {}]   ;;  %s1680_s3 = inlined_call_operand.vmem [shape: f32[8,128], index: 3, kind: input, shape index: {}]   ;;  %s1681_s4 = inlined_call_operand.vmem [shape: f32[8,1024], index: 4, kind: output, shape index: {}]  }
   0x1   :  { %s1506_s17 = smov 0  }
   0x2 LB: > { %s1269_s18 = sadd.s32 4294967295, %s1473_s17   ;;  %s1519_s19 = sadd.s32 1, %s1473_s17   ;;  %s1473_s17 = sphi %s1506_s17, %s1684_s17   ;;  %s1469_s16 = sphi %s1504_s16, %s1683_s16   ;;  %s1465_s15 = sphi %s1502_s15, %s1682_s15  }
   0x3   : > { %s18_s20 = ssub.s32 %s1473_s17, %s1519_s19  ;;  %s21_s21 = sadd.s32 1, %s1469_s16 }
   0x4   : > { %p19_p0 = scmp.eq.s32.totalorder %s18_s20, 0  ;;  %p28_p1 = scmp.ne.s32.totalorder %s1469_s16, %s1465_s15 }
   0x5   : > { %p29_p2 = scmp.eq.s32.totalorder %s1473_s17, 0  ;;  %p1272_p4 = scmp.ge.s32.totalorder %s1473_s17, 2 }
   0x6   : > { %s1528_s22 = scalar_select %p19_p0, %s1469_s16, %s21_s21  }
   0x7   : > { %p30_p3 = por %p29_p2, %p28_p1  ;;  %152 = sbr.rel (%p1272_p4) target bundleno = 21 (0x15), region = 28 }
   0xe   : > { %155 = sbr.rel (!%p30_p3) target bundleno = 21 (0x15), region = 32  ;;  %s157_s23 = sand.u32 (%p30_p3), 1, %s1469_s16  }
   0xf   : > { %s1322_s24 = sshll.u32 (%p30_p3), %s1473_s17, 4  ;;  %s1273_s25 = sshll.u32 (%p30_p3), %s157_s23, 5 }
  0x10   : > { %s162_s28 = scalar_lea.vmem (%p30_p3), %s1677_s0, %s1322_s24  ;;  %s159_s29 = scalar_lea.vmem (%p30_p3), [#allocation2], %s1273_s25 }
  0x11   : > { %v175_v0 = vld [vmem:[%s162_s28] sm:$0xff] (%p30_p3)  ;;  %v177_v1 = vld [vmem:[%s162_s28 + $0x8] sm:$0xff] (%p30_p3) }
  0x12   : > { %v179_v2 = vld [vmem:[%s162_s28 + $0x20] sm:$0xff] (%p30_p3)  ;;  %176 = vst [vmem:[%s159_s29] sm:$0xff] (%p30_p3), %v175_v0  ;;  %178 = vst [vmem:[%s159_s29 + $0x8] sm:$0xff] (%p30_p3), %v177_v1  ;;  %v181_v3 = vld [vmem:[%s162_s28 + $0x28] sm:$0xff] (%p30_p3) }
  0x13   : > { %180 = vst [vmem:[%s159_s29 + $0x10] sm:$0xff] (%p30_p3), %v179_v2  ;;  %182 = vst [vmem:[%s159_s29 + $0x18] sm:$0xff] (%p30_p3), %v181_v3 }
  0x15 PF: > { %p1276_p5 = scmp.ge.s32.totalorder %s1473_s17, 1  ;;  %p187_p6 = scmp.lt.s32.totalorder %s1473_s17, 3 }
  0x17   : > { %p188_p7 = pnand %p1276_p5, %p187_p6 }
  0x18   : > { %s194_s30 = sand.u32 (!%p188_p7), 1, %s1465_s15   ;;  %v1475_v4 = vmov (!%p188_p7), 0   ;;  %v1419_v9 = vld [vmem:[%s1678_s1] sm:$0xff] (!%p188_p7)   ;;  %vm307_vm0 = vcmask (!%p188_p7), 130048   ;;  %v1420_v10 = vld [vmem:[%s1678_s1 + $0x8] sm:$0xff] (!%p188_p7)   ;;  %v1421_v11 = vld [vmem:[%s1678_s1 + $0x10] sm:$0xff] (!%p188_p7)  }
  0x19   : > { %191 = sbr.rel (%p188_p7) target bundleno = 834 (0x342), region = 55  ;;  %s1277_s5 = sshll.u32 (!%p188_p7), %s194_s30, 5  ;;  %364 = vmatprep.mubr.bf16.mxu0 (!%p188_p7), %v1475_v4  ;;  %477 = vmatprep.mubr.bf16.mxu1 (!%p188_p7), %v1475_v4  ;;  %v1422_v12 = vld [vmem:[%s1678_s1 + $0x18] sm:$0xff] (!%p188_p7)   ;;  %v1423_v13 = vld [vmem:[%s1678_s1 + $0x20] sm:$0xff] (!%p188_p7)   ;;  %v1424_v14 = vld [vmem:[%s1678_s1 + $0x28] sm:$0xff] (!%p188_p7)  }
  0x1a   : > { %s196_s6 = scalar_lea.vmem (!%p188_p7), [#allocation2], %s1277_s5  ;;  %v1425_v15 = vld [vmem:[%s1678_s1 + $0x30] sm:$0xff] (!%p188_p7)   ;;  %v1426_v16 = vld [vmem:[%s1678_s1 + $0x38] sm:$0xff] (!%p188_p7)   ;;  %s1278_s25 = sshll.u32 (!%p188_p7), %s1269_s18, 2 }
  0x1b   : > { %v1413_v5 = vld [vmem:[%s196_s6 + $0x4] ss:$16 sps:$4 sm:$0xff] (!%p188_p7)   ;;  %v1415_v6 = vld [vmem:[%s196_s6 + $0xc] ss:$16 sps:$4 sm:$0xff] (!%p188_p7)   ;;  %v1417_v7 = vld [vmem:[%s196_s6] ss:$16 sps:$4 sm:$0xff] (!%p188_p7)  }
  0x1c   : > { %332 = vmatprep.subr.bf16.mxu0 (!%p188_p7), %v1413_v5  ;;  %v1418_v8 = vld [vmem:[%s196_s6 + $0x8] ss:$16 sps:$4 sm:$0xff] (!%p188_p7)   ;;  %445 = vmatprep.subr.bf16.mxu1 (!%p188_p7), %v1415_v6  ;;  %p221_p8 = scmp.lt.s32.totalorder (!%p188_p7), %s1278_s25, 7 }
  0x1d   : > { %333 = vmatpush1.bf16.msra.mxu0 (!%p188_p7), %v1417_v7  ;;  %446 = vmatpush1.bf16.msra.mxu1 (!%p188_p7), %v1418_v8 }
  0x20   : > { %1292 = vmatmul.mubr.msk.bf16.vlgmr.msra.gmra.mrb[0].mxu0 %vm307_vm0, %v1419_v9  ;;  %1300 = vmatmul.mubr.msk.bf16.vlgmr.msra.gmra.mrb[0].mxu1 %vm307_vm0, %v1419_v9  ;;  %s1686_s25 = smov (!%p221_p8, %s1278_s25), 7 }
  0x21   : > { %374 = vmatprep.mubr.bf16.mxu0 %v1475_v4  ;;  %487 = vmatprep.mubr.bf16.mxu1 %v1475_v4  ;;  %s1279_s26 = sshll.u32 %s1686_s25, 3 }
  0x22   : > { %s224_s27 = scalar_lea.vmem %s1681_s4, %s1279_s26 }
  0x28   : > { %1293 = vmatmul.mubr.msk.bf16.gmra.mrb[4].mxu0 %vm307_vm0, %v1420_v10  ;;  %1301 = vmatmul.mubr.msk.bf16.gmra.mrb[4].mxu1 %vm307_vm0, %v1420_v10 }
  0x29   : > { %384 = vmatprep.mubr.bf16.mxu0 %v1475_v4  ;;  %497 = vmatprep.mubr.bf16.mxu1 %v1475_v4 }
  0x30   : > { %1294 = vmatmul.mubr.msk.bf16.gmra.mrb[8].mxu0 %vm307_vm0, %v1421_v11  ;;  %1302 = vmatmul.mubr.msk.bf16.gmra.mrb[8].mxu1 %vm307_vm0, %v1421_v11 }
  0x31   : > { %394 = vmatprep.mubr.bf16.mxu0 %v1475_v4  ;;  %507 = vmatprep.mubr.bf16.mxu1 %v1475_v4 }
  0x38   : > { %1295 = vmatmul.mubr.msk.bf16.gmra.mrb[12].mxu0 %vm307_vm0, %v1422_v12  ;;  %1303 = vmatmul.mubr.msk.bf16.gmra.mrb[12].mxu1 %vm307_vm0, %v1422_v12 }
  0x39   : > { %404 = vmatprep.mubr.bf16.mxu0 %v1475_v4  ;;  %517 = vmatprep.mubr.bf16.mxu1 %v1475_v4 }
  0x40   : > { %1296 = vmatmul.mubr.msk.bf16.gmra.mrb[16].mxu0 %vm307_vm0, %v1423_v13  ;;  %1304 = vmatmul.mubr.msk.bf16.gmra.mrb[16].mxu1 %vm307_vm0, %v1423_v13 }
  0x41   : > { %414 = vmatprep.mubr.bf16.mxu0 %v1475_v4  ;;  %527 = vmatprep.mubr.bf16.mxu1 %v1475_v4 }
  0x48   : > { %1297 = vmatmul.mubr.msk.bf16.gmra.mrb[20].mxu0 %vm307_vm0, %v1424_v14  ;;  %1305 = vmatmul.mubr.msk.bf16.gmra.mrb[20].mxu1 %vm307_vm0, %v1424_v14 }
  0x49   : > { %424 = vmatprep.mubr.bf16.mxu0 %v1475_v4  ;;  %537 = vmatprep.mubr.bf16.mxu1 %v1475_v4 }
  0x50   : > { %1298 = vmatmul.mubr.msk.bf16.gmra.mrb[24].mxu0 %vm307_vm0, %v1425_v15  ;;  %1306 = vmatmul.mubr.msk.bf16.gmra.mrb[24].mxu1 %vm307_vm0, %v1425_v15 }
  0x51   : > { %434 = vmatprep.mubr.bf16.mxu0 %v1475_v4  ;;  %547 = vmatprep.mubr.bf16.mxu1 %v1475_v4 }
  0x58   : > { %1299 = vmatmul.mubr.msk.bf16.gmra.mrb[28].mxu0 %vm307_vm0, %v1426_v16  ;;  %1307 = vmatmul.mubr.msk.bf16.gmra.mrb[28].mxu1 %vm307_vm0, %v1426_v16 }
  0x59   : > { %750 = vmatprep.mubr.bf16.mxu0 %v1475_v4  ;;  %863 = vmatprep.mubr.bf16.mxu1 %v1475_v4 }
  0xf3   : > { %v366_v17 = vpop.f32.mrb[0].mxu0  ;;  %v479_v18 = vpop.f32.mrb[0].mxu1 }
  0xf4   : > { %v560_v19 = vmax.f32 %v479_v18, 0.0  ;;  %v368_v20 = vpop.f32.mrb[1].mxu0  ;;  %v481_v21 = vpop.f32.mrb[1].mxu1  ;;  %v558_v25 = vmax.f32 %v366_v17, 0.0 }
  0xf5   : > { %v561_v22 = vmax.f32 %v481_v21, 0.0  ;;  %v370_v23 = vpop.f32.mrb[2].mxu0  ;;  %v483_v24 = vpop.f32.mrb[2].mxu1  ;;  %v559_v30 = vmax.f32 %v368_v20, 0.0 }
  0xf6   : > { %v562_v26 = vmax.f32 %v370_v23, 0.0  ;;  %v564_v27 = vmax.f32 %v483_v24, 0.0  ;;  %v372_v28 = vpop.f32.mrb[3].mxu0  ;;  %v485_v29 = vpop.f32.mrb[3].mxu1 }
  0xf7   : > { %v563_v31 = vmax.f32 %v372_v28, 0.0  ;;  %v565_v32 = vmax.f32 %v485_v29, 0.0 }
  0xf8   : > { %v622_v33 = vpack.c.bf16 %v562_v26, %v558_v25  ;;  %v624_v34 = vpack.c.bf16 %v564_v27, %v560_v19 }
  0xf9   : > { %v623_v35 = vpack.c.bf16 %v563_v31, %v559_v30  ;;  %v625_v36 = vpack.c.bf16 %v565_v32, %v561_v22 }
  0xfb   : > { %v376_v37 = vpop.f32.mrb[4].mxu0  ;;  %v489_v38 = vpop.f32.mrb[4].mxu1  ;;  %718 = vmatprep.subr.bf16.mxu0 %v623_v35  ;;  %831 = vmatprep.subr.bf16.mxu1 %v625_v36 }
  0xfc   : > { %v568_v39 = vmax.f32 %v489_v38, 0.0  ;;  %v378_v40 = vpop.f32.mrb[5].mxu0  ;;  %v491_v41 = vpop.f32.mrb[5].mxu1  ;;  %719 = vmatpush1.bf16.msra.mxu0 %v622_v33  ;;  %832 = vmatpush1.bf16.msra.mxu1 %v624_v34  ;;  %v566_v45 = vmax.f32 %v376_v37, 0.0 }
  0xfd   : > { %v569_v42 = vmax.f32 %v491_v41, 0.0  ;;  %v380_v43 = vpop.f32.mrb[6].mxu0  ;;  %v493_v44 = vpop.f32.mrb[6].mxu1  ;;  %v567_v50 = vmax.f32 %v378_v40, 0.0 }
  0xfe   : > { %v570_v46 = vmax.f32 %v380_v43, 0.0  ;;  %v572_v47 = vmax.f32 %v493_v44, 0.0  ;;  %v382_v48 = vpop.f32.mrb[7].mxu0  ;;  %v495_v49 = vpop.f32.mrb[7].mxu1 }
  0xff   : > { %v571_v51 = vmax.f32 %v382_v48, 0.0  ;;  %v573_v52 = vmax.f32 %v495_v49, 0.0 }
 0x100   : > { %v626_v53 = vpack.c.bf16 %v570_v46, %v566_v45  ;;  %v628_v54 = vpack.c.bf16 %v572_v47, %v568_v39 }
 0x101   : > { %v627_v55 = vpack.c.bf16 %v571_v51, %v567_v50  ;;  %v629_v56 = vpack.c.bf16 %v573_v52, %v569_v42 }
 0x103   : > { %v386_v57 = vpop.f32.mrb[8].mxu0  ;;  %v499_v58 = vpop.f32.mrb[8].mxu1  ;;  %720 = vmatprep.subr.bf16.mxu0 %v627_v55  ;;  %833 = vmatprep.subr.bf16.mxu1 %v629_v56 }
 0x104   : > { %v576_v59 = vmax.f32 %v499_v58, 0.0  ;;  %v388_v60 = vpop.f32.mrb[9].mxu0  ;;  %v501_v61 = vpop.f32.mrb[9].mxu1  ;;  %721 = vmatpush1.bf16.msra.mxu0 %v626_v53  ;;  %834 = vmatpush1.bf16.msra.mxu1 %v628_v54  ;;  %v574_v1 = vmax.f32 %v386_v57, 0.0 }
 0x105   : > { %v577_v62 = vmax.f32 %v501_v61, 0.0  ;;  %v390_v63 = vpop.f32.mrb[10].mxu0  ;;  %v503_v0 = vpop.f32.mrb[10].mxu1  ;;  %v575_v7 = vmax.f32 %v388_v60, 0.0 }
 0x106   : > { %v578_v2 = vmax.f32 %v390_v63, 0.0  ;;  %v580_v3 = vmax.f32 %v503_v0, 0.0  ;;  %v392_v5 = vpop.f32.mrb[11].mxu0  ;;  %v505_v6 = vpop.f32.mrb[11].mxu1 }
 0x107   : > { %v579_v8 = vmax.f32 %v392_v5, 0.0  ;;  %v581_v9 = vmax.f32 %v505_v6, 0.0 }
 0x108   : > { %v630_v10 = vpack.c.bf16 %v578_v2, %v574_v1  ;;  %v632_v11 = vpack.c.bf16 %v580_v3, %v576_v59 }
 0x109   : > { %v631_v12 = vpack.c.bf16 %v579_v8, %v575_v7  ;;  %v633_v13 = vpack.c.bf16 %v581_v9, %v577_v62 }
 0x10b   : > { %v396_v14 = vpop.f32.mrb[12].mxu0  ;;  %v509_v15 = vpop.f32.mrb[12].mxu1  ;;  %722 = vmatprep.subr.bf16.mxu0 %v631_v12  ;;  %835 = vmatprep.subr.bf16.mxu1 %v633_v13 }
 0x10c   : > { %v584_v16 = vmax.f32 %v509_v15, 0.0  ;;  %v398_v17 = vpop.f32.mrb[13].mxu0  ;;  %v511_v18 = vpop.f32.mrb[13].mxu1  ;;  %723 = vmatpush1.bf16.msra.mxu0 %v630_v10  ;;  %836 = vmatpush1.bf16.msra.mxu1 %v632_v11  ;;  %v582_v22 = vmax.f32 %v396_v14, 0.0 }
 0x10d   : > { %v585_v19 = vmax.f32 %v511_v18, 0.0  ;;  %v400_v20 = vpop.f32.mrb[14].mxu0  ;;  %v513_v21 = vpop.f32.mrb[14].mxu1  ;;  %v583_v27 = vmax.f32 %v398_v17, 0.0 }
 0x10e   : > { %v586_v23 = vmax.f32 %v400_v20, 0.0  ;;  %v588_v24 = vmax.f32 %v513_v21, 0.0  ;;  %v402_v25 = vpop.f32.mrb[15].mxu0  ;;  %v515_v26 = vpop.f32.mrb[15].mxu1 }
 0x10f   : > { %v587_v28 = vmax.f32 %v402_v25, 0.0  ;;  %v589_v29 = vmax.f32 %v515_v26, 0.0 }
 0x110   : > { %v634_v30 = vpack.c.bf16 %v586_v23, %v582_v22  ;;  %v636_v31 = vpack.c.bf16 %v588_v24, %v584_v16 }
 0x111   : > { %v635_v32 = vpack.c.bf16 %v587_v28, %v583_v27  ;;  %v637_v33 = vpack.c.bf16 %v589_v29, %v585_v19 }
 0x113   : > { %v406_v34 = vpop.f32.mrb[16].mxu0  ;;  %v519_v35 = vpop.f32.mrb[16].mxu1  ;;  %724 = vmatprep.subr.bf16.mxu0 %v635_v32  ;;  %837 = vmatprep.subr.bf16.mxu1 %v637_v33 }
 0x114   : > { %v592_v36 = vmax.f32 %v519_v35, 0.0  ;;  %v408_v37 = vpop.f32.mrb[17].mxu0  ;;  %v521_v38 = vpop.f32.mrb[17].mxu1  ;;  %725 = vmatpush1.bf16.msra.mxu0 %v634_v30  ;;  %838 = vmatpush1.bf16.msra.mxu1 %v636_v31  ;;  %v590_v42 = vmax.f32 %v406_v34, 0.0 }
 0x115   : > { %v593_v39 = vmax.f32 %v521_v38, 0.0  ;;  %v410_v40 = vpop.f32.mrb[18].mxu0  ;;  %v523_v41 = vpop.f32.mrb[18].mxu1  ;;  %v591_v47 = vmax.f32 %v408_v37, 0.0 }
 0x116   : > { %v594_v43 = vmax.f32 %v410_v40, 0.0  ;;  %v596_v44 = vmax.f32 %v523_v41, 0.0  ;;  %v412_v45 = vpop.f32.mrb[19].mxu0  ;;  %v525_v46 = vpop.f32.mrb[19].mxu1 }
 0x117   : > { %v595_v48 = vmax.f32 %v412_v45, 0.0  ;;  %v597_v49 = vmax.f32 %v525_v46, 0.0 }
 0x118   : > { %v638_v50 = vpack.c.bf16 %v594_v43, %v590_v42  ;;  %v640_v51 = vpack.c.bf16 %v596_v44, %v592_v36 }
 0x119   : > { %v639_v52 = vpack.c.bf16 %v595_v48, %v591_v47  ;;  %v641_v53 = vpack.c.bf16 %v597_v49, %v593_v39 }
 0x11b   : > { %v416_v54 = vpop.f32.mrb[20].mxu0  ;;  %v529_v55 = vpop.f32.mrb[20].mxu1  ;;  %726 = vmatprep.subr.bf16.mxu0 %v639_v52  ;;  %839 = vmatprep.subr.bf16.mxu1 %v641_v53  ;;  %v1428_v52 = vld [vmem:[%s1679_s2 + $0x8] sm:$0xff]   ;;  %v1429_v53 = vld [vmem:[%s1679_s2 + $0x10] sm:$0xff]  }
 0x11c   : > { %v600_v56 = vmax.f32 %v529_v55, 0.0  ;;  %v418_v57 = vpop.f32.mrb[21].mxu0  ;;  %v531_v58 = vpop.f32.mrb[21].mxu1  ;;  %727 = vmatpush1.bf16.msra.mxu0 %v638_v50  ;;  %840 = vmatpush1.bf16.msra.mxu1 %v640_v51  ;;  %v598_v62 = vmax.f32 %v416_v54, 0.0  ;;  %v1427_v51 = vld [vmem:[%s1679_s2] sm:$0xff]   ;;  %v1430_v54 = vld [vmem:[%s1679_s2 + $0x18] sm:$0xff]  }
 0x11d   : > { %v601_v59 = vmax.f32 %v531_v58, 0.0  ;;  %v420_v60 = vpop.f32.mrb[22].mxu0  ;;  %v533_v61 = vpop.f32.mrb[22].mxu1  ;;  %v599_v3 = vmax.f32 %v418_v57, 0.0  ;;  %v1431_v55 = vld [vmem:[%s1679_s2 + $0x20] sm:$0xff]   ;;  %v1433_v57 = vld [vmem:[%s1679_s2 + $0x30] sm:$0xff]  }
 0x11e   : > { %v602_v63 = vmax.f32 %v420_v60, 0.0  ;;  %v604_v0 = vmax.f32 %v533_v61, 0.0  ;;  %v422_v1 = vpop.f32.mrb[23].mxu0  ;;  %v535_v2 = vpop.f32.mrb[23].mxu1  ;;  %v1434_v58 = vld [vmem:[%s1679_s2 + $0x38] sm:$0xff]  }
 0x11f   : > { %v603_v5 = vmax.f32 %v422_v1, 0.0  ;;  %v605_v6 = vmax.f32 %v535_v2, 0.0 }
 0x120   : > { %v642_v7 = vpack.c.bf16 %v602_v63, %v598_v62  ;;  %v644_v8 = vpack.c.bf16 %v604_v0, %v600_v56  ;;  %v1432_v56 = vld [vmem:[%s1679_s2 + $0x28] sm:$0xff]  }
 0x121   : > { %v643_v9 = vpack.c.bf16 %v603_v5, %v599_v3  ;;  %v645_v10 = vpack.c.bf16 %v605_v6, %v601_v59  ;;  %v1476_v59 = vmov 0.0  }
 0x123   : > { %v426_v11 = vpop.f32.mrb[24].mxu0  ;;  %v539_v12 = vpop.f32.mrb[24].mxu1  ;;  %728 = vmatprep.subr.bf16.mxu0 %v643_v9  ;;  %841 = vmatprep.subr.bf16.mxu1 %v645_v10 }
 0x124   : > { %v608_v13 = vmax.f32 %v539_v12, 0.0  ;;  %v428_v14 = vpop.f32.mrb[25].mxu0  ;;  %v541_v15 = vpop.f32.mrb[25].mxu1  ;;  %729 = vmatpush1.bf16.msra.mxu0 %v642_v7  ;;  %842 = vmatpush1.bf16.msra.mxu1 %v644_v8  ;;  %v606_v19 = vmax.f32 %v426_v11, 0.0 }
 0x125   : > { %v609_v16 = vmax.f32 %v541_v15, 0.0  ;;  %v430_v17 = vpop.f32.mrb[26].mxu0  ;;  %v543_v18 = vpop.f32.mrb[26].mxu1  ;;  %v607_v24 = vmax.f32 %v428_v14, 0.0 }
 0x126   : > { %v610_v20 = vmax.f32 %v430_v17, 0.0  ;;  %v612_v21 = vmax.f32 %v543_v18, 0.0  ;;  %v432_v22 = vpop.f32.mrb[27].mxu0  ;;  %v545_v23 = vpop.f32.mrb[27].mxu1 }
 0x127   : > { %v611_v25 = vmax.f32 %v432_v22, 0.0  ;;  %v613_v26 = vmax.f32 %v545_v23, 0.0 }
 0x128   : > { %v646_v27 = vpack.c.bf16 %v610_v20, %v606_v19  ;;  %v648_v28 = vpack.c.bf16 %v612_v21, %v608_v13 }
 0x129   : > { %v647_v29 = vpack.c.bf16 %v611_v25, %v607_v24  ;;  %v649_v30 = vpack.c.bf16 %v613_v26, %v609_v16 }
 0x12b   : > { %v436_v31 = vpop.f32.mrb[28].mxu0  ;;  %v549_v32 = vpop.f32.mrb[28].mxu1  ;;  %730 = vmatprep.subr.bf16.mxu0 %v647_v29  ;;  %843 = vmatprep.subr.bf16.mxu1 %v649_v30 }
 0x12c   : > { %v616_v33 = vmax.f32 %v549_v32, 0.0  ;;  %v438_v34 = vpop.f32.mrb[29].mxu0  ;;  %v551_v35 = vpop.f32.mrb[29].mxu1  ;;  %731 = vmatpush1.bf16.msra.mxu0 %v646_v27  ;;  %844 = vmatpush1.bf16.msra.mxu1 %v648_v28  ;;  %v614_v39 = vmax.f32 %v436_v31, 0.0 }
 0x12d   : > { %v617_v36 = vmax.f32 %v551_v35, 0.0  ;;  %v440_v37 = vpop.f32.mrb[30].mxu0  ;;  %v553_v38 = vpop.f32.mrb[30].mxu1  ;;  %v615_v44 = vmax.f32 %v438_v34, 0.0 }
 0x12e   : > { %v618_v40 = vmax.f32 %v440_v37, 0.0  ;;  %v620_v41 = vmax.f32 %v553_v38, 0.0  ;;  %v442_v42 = vpop.f32.mrb[31].mxu0  ;;  %v555_v43 = vpop.f32.mrb[31].mxu1 }
 0x12f   : > { %v619_v45 = vmax.f32 %v442_v42, 0.0  ;;  %v621_v46 = vmax.f32 %v555_v43, 0.0 }
 0x130   : > { %v650_v47 = vpack.c.bf16 %v618_v40, %v614_v39  ;;  %v652_v48 = vpack.c.bf16 %v620_v41, %v616_v33 }
 0x131   : > { %v651_v49 = vpack.c.bf16 %v619_v45, %v615_v44  ;;  %v653_v50 = vpack.c.bf16 %v621_v46, %v617_v36 }
 0x133   : > { %732 = vmatprep.subr.bf16.mxu0 %v651_v49  ;;  %845 = vmatprep.subr.bf16.mxu1 %v653_v50 }
 0x134   : > { %733 = vmatpush1.bf16.msra.mxu0 %v650_v47  ;;  %846 = vmatpush1.bf16.msra.mxu1 %v652_v48 }
 0x137   : > { %751 = vmatmul.mubr.bf16.vlgmr.msra.gmra.mrb[32].mxu0 %v1427_v51  ;;  %864 = vmatmul.mubr.bf16.vlgmr.msra.gmra.mrb[32].mxu1 %v1427_v51 }
 0x138   : > { %760 = vmatprep.mubr.bf16.mxu0 %v1475_v4  ;;  %873 = vmatprep.mubr.bf16.mxu1 %v1475_v4 }
 0x13f   : > { %761 = vmatmul.mubr.bf16.gmra.mrb[36].mxu0 %v1428_v52  ;;  %874 = vmatmul.mubr.bf16.gmra.mrb[36].mxu1 %v1428_v52 }
 0x140   : > { %770 = vmatprep.mubr.bf16.mxu0 %v1475_v4  ;;  %883 = vmatprep.mubr.bf16.mxu1 %v1475_v4 }
 0x147   : > { %771 = vmatmul.mubr.bf16.gmra.mrb[40].mxu0 %v1429_v53  ;;  %884 = vmatmul.mubr.bf16.gmra.mrb[40].mxu1 %v1429_v53 }
 0x148   : > { %780 = vmatprep.mubr.bf16.mxu0 %v1475_v4  ;;  %893 = vmatprep.mubr.bf16.mxu1 %v1475_v4 }
 0x14f   : > { %781 = vmatmul.mubr.bf16.gmra.mrb[44].mxu0 %v1430_v54  ;;  %894 = vmatmul.mubr.bf16.gmra.mrb[44].mxu1 %v1430_v54 }
 0x150   : > { %790 = vmatprep.mubr.bf16.mxu0 %v1475_v4  ;;  %903 = vmatprep.mubr.bf16.mxu1 %v1475_v4 }
 0x157   : > { %791 = vmatmul.mubr.bf16.gmra.mrb[48].mxu0 %v1431_v55  ;;  %904 = vmatmul.mubr.bf16.gmra.mrb[48].mxu1 %v1431_v55 }
 0x158   : > { %800 = vmatprep.mubr.bf16.mxu0 %v1475_v4  ;;  %913 = vmatprep.mubr.bf16.mxu1 %v1475_v4 }
 0x15f   : > { %801 = vmatmul.mubr.bf16.gmra.mrb[52].mxu0 %v1432_v56  ;;  %914 = vmatmul.mubr.bf16.gmra.mrb[52].mxu1 %v1432_v56 }
 0x160   : > { %810 = vmatprep.mubr.bf16.mxu0 %v1475_v4  ;;  %923 = vmatprep.mubr.bf16.mxu1 %v1475_v4 }
 0x167   : > { %811 = vmatmul.mubr.bf16.gmra.mrb[56].mxu0 %v1433_v57  ;;  %924 = vmatmul.mubr.bf16.gmra.mrb[56].mxu1 %v1433_v57 }
 0x168   : > { %820 = vmatprep.mubr.bf16.mxu0 %v1475_v4  ;;  %933 = vmatprep.mubr.bf16.mxu1 %v1475_v4 }
 0x16f   : > { %821 = vmatmul.mubr.bf16.gmra.mrb[60].mxu0 %v1434_v58  ;;  %934 = vmatmul.mubr.bf16.gmra.mrb[60].mxu1 %v1434_v58 }
 0x170   : > { %1073 = vmatprep.mubr.f32.mxu0 %v1476_v59  ;;  %1144 = vmatprep.mubr.f32.mxu1 %v1476_v59 }
 0x20a   : > { %v1635_v60 = vpop.f32.mrb[32].mxu0  ;;  %v1637_v61 = vpop.f32.mrb[32].mxu1 }
 0x20b   : > { %v946_v62 = vmax.f32 %v1637_v61, 0.0  ;;  %v1640_v63 = vpop.f32.mrb[33].mxu0  ;;  %v1642_v0 = vpop.f32.mrb[33].mxu1  ;;  %v944_v3 = vmax.f32 %v1635_v60, 0.0 }
 0x20c   : > { %v947_v4 = vmax.f32 %v1642_v0, 0.0  ;;  %v756_v1 = vpop.f32.mrb[34].mxu0  ;;  %v869_v2 = vpop.f32.mrb[34].mxu1  ;;  %v945_v9 = vmax.f32 %v1640_v63, 0.0 }
 0x20d   : > { %v948_v5 = vmax.f32 %v756_v1, 0.0  ;;  %v950_v6 = vmax.f32 %v869_v2, 0.0  ;;  %v758_v7 = vpop.f32.mrb[35].mxu0  ;;  %v871_v8 = vpop.f32.mrb[35].mxu1 }
 0x20e   : > { %v949_v10 = vmax.f32 %v758_v7, 0.0  ;;  %v951_v11 = vmax.f32 %v871_v8, 0.0 }
 0x20f   : > { %v1325_v12 = vpack.c.bf16 %v948_v5, %v944_v3  ;;  %v1357_v13 = vpack.c.bf16 %v950_v6, %v946_v62 }
 0x210   : > { %v1323_v14 = vpack.c.bf16 %v949_v10, %v945_v9  ;;  %v1355_v15 = vpack.c.bf16 %v951_v11, %v947_v4 }
 0x212   : > { %v762_v16 = vpop.f32.mrb[36].mxu0  ;;  %v875_v17 = vpop.f32.mrb[36].mxu1  ;;  %1324 = vmatprep.subr.bf16.mxu0 %v1323_v14  ;;  %1356 = vmatprep.subr.bf16.mxu1 %v1355_v15 }
 0x213   : > { %v954_v18 = vmax.f32 %v875_v17, 0.0  ;;  %v764_v19 = vpop.f32.mrb[37].mxu0  ;;  %v877_v20 = vpop.f32.mrb[37].mxu1  ;;  %1326 = vmatpush1.bf16.msra.mxu0 %v1325_v12  ;;  %1358 = vmatpush1.bf16.msra.mxu1 %v1357_v13  ;;  %v952_v24 = vmax.f32 %v762_v16, 0.0 }
 0x214   : > { %v955_v21 = vmax.f32 %v877_v20, 0.0  ;;  %v766_v22 = vpop.f32.mrb[38].mxu0  ;;  %v879_v23 = vpop.f32.mrb[38].mxu1  ;;  %v953_v29 = vmax.f32 %v764_v19, 0.0 }
 0x215   : > { %v956_v25 = vmax.f32 %v766_v22, 0.0  ;;  %v958_v26 = vmax.f32 %v879_v23, 0.0  ;;  %v768_v27 = vpop.f32.mrb[39].mxu0  ;;  %v881_v28 = vpop.f32.mrb[39].mxu1 }
 0x216   : > { %v957_v30 = vmax.f32 %v768_v27, 0.0  ;;  %v959_v31 = vmax.f32 %v881_v28, 0.0 }
 0x217   : > { %v1329_v32 = vpack.c.bf16 %v956_v25, %v952_v24  ;;  %v1361_v33 = vpack.c.bf16 %v958_v26, %v954_v18 }
 0x218   : > { %v1327_v34 = vpack.c.bf16 %v957_v30, %v953_v29  ;;  %v1359_v35 = vpack.c.bf16 %v959_v31, %v955_v21 }
 0x21a   : > { %v772_v36 = vpop.f32.mrb[40].mxu0  ;;  %v885_v37 = vpop.f32.mrb[40].mxu1  ;;  %1328 = vmatprep.subr.bf16.mxu0 %v1327_v34  ;;  %1360 = vmatprep.subr.bf16.mxu1 %v1359_v35 }
 0x21b   : > { %v962_v38 = vmax.f32 %v885_v37, 0.0  ;;  %v774_v39 = vpop.f32.mrb[41].mxu0  ;;  %v887_v40 = vpop.f32.mrb[41].mxu1  ;;  %1330 = vmatpush1.bf16.msra.mxu0 %v1329_v32  ;;  %1362 = vmatpush1.bf16.msra.mxu1 %v1361_v33  ;;  %v960_v44 = vmax.f32 %v772_v36, 0.0 }
 0x21c   : > { %v963_v41 = vmax.f32 %v887_v40, 0.0  ;;  %v776_v42 = vpop.f32.mrb[42].mxu0  ;;  %v889_v43 = vpop.f32.mrb[42].mxu1  ;;  %v961_v49 = vmax.f32 %v774_v39, 0.0 }
 0x21d   : > { %v964_v45 = vmax.f32 %v776_v42, 0.0  ;;  %v966_v46 = vmax.f32 %v889_v43, 0.0  ;;  %v778_v47 = vpop.f32.mrb[43].mxu0  ;;  %v891_v48 = vpop.f32.mrb[43].mxu1 }
 0x21e   : > { %v965_v50 = vmax.f32 %v778_v47, 0.0  ;;  %v967_v51 = vmax.f32 %v891_v48, 0.0 }
 0x21f   : > { %v1333_v52 = vpack.c.bf16 %v964_v45, %v960_v44  ;;  %v1365_v53 = vpack.c.bf16 %v966_v46, %v962_v38 }
 0x220   : > { %v1331_v54 = vpack.c.bf16 %v965_v50, %v961_v49  ;;  %v1363_v55 = vpack.c.bf16 %v967_v51, %v963_v41 }
 0x222   : > { %v782_v56 = vpop.f32.mrb[44].mxu0  ;;  %v895_v57 = vpop.f32.mrb[44].mxu1  ;;  %1332 = vmatprep.subr.bf16.mxu0 %v1331_v54  ;;  %1364 = vmatprep.subr.bf16.mxu1 %v1363_v55 }
 0x223   : > { %v970_v58 = vmax.f32 %v895_v57, 0.0  ;;  %v784_v59 = vpop.f32.mrb[45].mxu0  ;;  %v897_v62 = vpop.f32.mrb[45].mxu1  ;;  %1334 = vmatpush1.bf16.msra.mxu0 %v1333_v52  ;;  %1366 = vmatpush1.bf16.msra.mxu1 %v1365_v53  ;;  %v968_v3 = vmax.f32 %v782_v56, 0.0 }
 0x224   : > { %v971_v4 = vmax.f32 %v897_v62, 0.0  ;;  %v786_v1 = vpop.f32.mrb[46].mxu0  ;;  %v899_v2 = vpop.f32.mrb[46].mxu1  ;;  %v969_v9 = vmax.f32 %v784_v59, 0.0 }
 0x225   : > { %v972_v5 = vmax.f32 %v786_v1, 0.0  ;;  %v974_v6 = vmax.f32 %v899_v2, 0.0  ;;  %v788_v7 = vpop.f32.mrb[47].mxu0  ;;  %v901_v8 = vpop.f32.mrb[47].mxu1 }
 0x226   : > { %v973_v10 = vmax.f32 %v788_v7, 0.0  ;;  %v975_v11 = vmax.f32 %v901_v8, 0.0 }
 0x227   : > { %v1337_v12 = vpack.c.bf16 %v972_v5, %v968_v3  ;;  %v1369_v13 = vpack.c.bf16 %v974_v6, %v970_v58 }
 0x228   : > { %v1335_v14 = vpack.c.bf16 %v973_v10, %v969_v9  ;;  %v1367_v15 = vpack.c.bf16 %v975_v11, %v971_v4 }
 0x22a   : > { %v792_v16 = vpop.f32.mrb[48].mxu0  ;;  %v905_v17 = vpop.f32.mrb[48].mxu1  ;;  %1336 = vmatprep.subr.bf16.mxu0 %v1335_v14  ;;  %1368 = vmatprep.subr.bf16.mxu1 %v1367_v15 }
 0x22b   : > { %v978_v18 = vmax.f32 %v905_v17, 0.0  ;;  %v794_v19 = vpop.f32.mrb[49].mxu0  ;;  %v907_v20 = vpop.f32.mrb[49].mxu1  ;;  %1338 = vmatpush1.bf16.msra.mxu0 %v1337_v12  ;;  %1370 = vmatpush1.bf16.msra.mxu1 %v1369_v13  ;;  %v976_v24 = vmax.f32 %v792_v16, 0.0 }
 0x22c   : > { %v979_v21 = vmax.f32 %v907_v20, 0.0  ;;  %v796_v22 = vpop.f32.mrb[50].mxu0  ;;  %v909_v23 = vpop.f32.mrb[50].mxu1  ;;  %v977_v29 = vmax.f32 %v794_v19, 0.0 }
 0x22d   : > { %v980_v25 = vmax.f32 %v796_v22, 0.0  ;;  %v982_v26 = vmax.f32 %v909_v23, 0.0  ;;  %v798_v27 = vpop.f32.mrb[51].mxu0  ;;  %v911_v28 = vpop.f32.mrb[51].mxu1 }
 0x22e   : > { %v981_v30 = vmax.f32 %v798_v27, 0.0  ;;  %v983_v31 = vmax.f32 %v911_v28, 0.0 }
 0x22f   : > { %v1341_v32 = vpack.c.bf16 %v980_v25, %v976_v24  ;;  %v1373_v33 = vpack.c.bf16 %v982_v26, %v978_v18 }
 0x230   : > { %v1339_v34 = vpack.c.bf16 %v981_v30, %v977_v29  ;;  %v1371_v35 = vpack.c.bf16 %v983_v31, %v979_v21 }
 0x232   : > { %v802_v36 = vpop.f32.mrb[52].mxu0  ;;  %v915_v37 = vpop.f32.mrb[52].mxu1  ;;  %1340 = vmatprep.subr.bf16.mxu0 %v1339_v34  ;;  %1372 = vmatprep.subr.bf16.mxu1 %v1371_v35 }
 0x233   : > { %v986_v38 = vmax.f32 %v915_v37, 0.0  ;;  %v804_v39 = vpop.f32.mrb[53].mxu0  ;;  %v917_v40 = vpop.f32.mrb[53].mxu1  ;;  %1342 = vmatpush1.bf16.msra.mxu0 %v1341_v32  ;;  %1374 = vmatpush1.bf16.msra.mxu1 %v1373_v33  ;;  %v984_v44 = vmax.f32 %v802_v36, 0.0  ;;  %v1008_v36 = vld [vmem:[%s1680_s3] sm:$0xff] }
 0x234   : > { %v987_v41 = vmax.f32 %v917_v40, 0.0  ;;  %v806_v42 = vpop.f32.mrb[54].mxu0  ;;  %v919_v43 = vpop.f32.mrb[54].mxu1  ;;  %v985_v49 = vmax.f32 %v804_v39, 0.0 }
 0x235   : > { %v988_v45 = vmax.f32 %v806_v42, 0.0  ;;  %v990_v46 = vmax.f32 %v919_v43, 0.0  ;;  %v808_v47 = vpop.f32.mrb[55].mxu0  ;;  %v921_v48 = vpop.f32.mrb[55].mxu1 }
 0x236   : > { %v989_v50 = vmax.f32 %v808_v47, 0.0  ;;  %v991_v51 = vmax.f32 %v921_v48, 0.0  ;;  %v1175_v47 = vlaneseq }
 0x237   : > { %v1345_v52 = vpack.c.bf16 %v988_v45, %v984_v44  ;;  %v1377_v53 = vpack.c.bf16 %v990_v46, %v986_v38 }
 0x238   : > { %v1343_v54 = vpack.c.bf16 %v989_v50, %v985_v49  ;;  %v1375_v55 = vpack.c.bf16 %v991_v51, %v987_v41 }
 0x23a   : > { %v812_v56 = vpop.f32.mrb[56].mxu0  ;;  %v925_v57 = vpop.f32.mrb[56].mxu1  ;;  %1344 = vmatprep.subr.bf16.mxu0 %v1343_v54  ;;  %1376 = vmatprep.subr.bf16.mxu1 %v1375_v55  ;;  %v1176_v54 = vshrl.u32 %v1175_v47, 7 }
 0x23b   : > { %v994_v58 = vmax.f32 %v925_v57, 0.0  ;;  %v814_v59 = vpop.f32.mrb[57].mxu0  ;;  %v927_v62 = vpop.f32.mrb[57].mxu1  ;;  %1346 = vmatpush1.bf16.msra.mxu0 %v1345_v52  ;;  %1378 = vmatpush1.bf16.msra.mxu1 %v1377_v53  ;;  %v992_v3 = vmax.f32 %v812_v56, 0.0 }
 0x23c   : > { %v995_v4 = vmax.f32 %v927_v62, 0.0  ;;  %v816_v1 = vpop.f32.mrb[58].mxu0  ;;  %v929_v2 = vpop.f32.mrb[58].mxu1  ;;  %v993_v9 = vmax.f32 %v814_v59, 0.0  ;;  %v1180_v55 = vsub.s32 0, %v1176_v54  ;;  %vm1194_vm1 = vcmp.le.s32.totalorder %v1176_v54, 3 }
 0x23d   : > { %v996_v5 = vmax.f32 %v816_v1, 0.0  ;;  %v998_v6 = vmax.f32 %v929_v2, 0.0  ;;  %v818_v7 = vpop.f32.mrb[59].mxu0  ;;  %v931_v8 = vpop.f32.mrb[59].mxu1  ;;  %vm1177_vm2 = vcmp.eq.s32.totalorder %v1176_v54, 0 }
 0x23e   : > { %v997_v10 = vmax.f32 %v818_v7, 0.0  ;;  %v999_v11 = vmax.f32 %v931_v8, 0.0  ;;  %v1181_v57 = vrot.slane %v1635_v60, %v1180_v55  ;;  %v1189_v59 = vrot.slane %v1637_v61, %v1180_v55 }
 0x23f   : > { %v1349_v12 = vpack.c.bf16 %v996_v5, %v992_v3  ;;  %v1381_v13 = vpack.c.bf16 %v998_v6, %v994_v58  ;;  %v1185_v1 = vrot.slane %v1640_v63, %v1180_v55  ;;  %v1193_v6 = vrot.slane %v1642_v0, %v1180_v55 }
 0x240   : > { %v1347_v14 = vpack.c.bf16 %v997_v10, %v993_v9  ;;  %v1379_v15 = vpack.c.bf16 %v999_v11, %v995_v4 }
 0x242   : > { %v822_v16 = vpop.f32.mrb[60].mxu0  ;;  %v935_v17 = vpop.f32.mrb[60].mxu1  ;;  %1348 = vmatprep.subr.bf16.mxu0 %v1347_v14  ;;  %1380 = vmatprep.subr.bf16.mxu1 %v1379_v15 }
 0x243   : > { %v1002_v18 = vmax.f32 %v935_v17, 0.0  ;;  %v824_v19 = vpop.f32.mrb[61].mxu0  ;;  %v937_v20 = vpop.f32.mrb[61].mxu1  ;;  %1350 = vmatpush1.bf16.msra.mxu0 %v1349_v12  ;;  %1382 = vmatpush1.bf16.msra.mxu1 %v1381_v13  ;;  %v1000_v24 = vmax.f32 %v822_v16, 0.0 }
 0x244   : > { %v1003_v21 = vmax.f32 %v937_v20, 0.0  ;;  %v826_v22 = vpop.f32.mrb[62].mxu0  ;;  %v939_v23 = vpop.f32.mrb[62].mxu1  ;;  %v1001_v29 = vmax.f32 %v824_v19, 0.0 }
 0x245   : > { %v1004_v25 = vmax.f32 %v826_v22, 0.0  ;;  %v1006_v26 = vmax.f32 %v939_v23, 0.0  ;;  %v828_v27 = vpop.f32.mrb[63].mxu0  ;;  %v941_v28 = vpop.f32.mrb[63].mxu1 }
 0x246   : > { %v1005_v30 = vmax.f32 %v828_v27, 0.0  ;;  %v1007_v31 = vmax.f32 %v941_v28, 0.0 }
 0x247   : > { %v1353_v32 = vpack.c.bf16 %v1004_v25, %v1000_v24  ;;  %v1385_v33 = vpack.c.bf16 %v1006_v26, %v1002_v18 }
 0x248   : > { %v1351_v34 = vpack.c.bf16 %v1005_v30, %v1001_v29  ;;  %v1383_v35 = vpack.c.bf16 %v1007_v31, %v1003_v21 }
 0x24a   : > { %1352 = vmatprep.subr.bf16.mxu0 %v1351_v34  ;;  %1384 = vmatprep.subr.bf16.mxu1 %v1383_v35 }
 0x24b   : > { %1354 = vmatpush1.bf16.msra.mxu0 %v1353_v32  ;;  %1386 = vmatpush1.bf16.msra.mxu1 %v1385_v33 }
 0x24e   : > { %1074 = vmatmul.mubr.f32.vlgmr.msra.gmra.mrb[64].mxu0 %v1008_v36  ;;  %1145 = vmatmul.mubr.f32.vlgmr.msra.gmra.mrb[64].mxu1 %v1008_v36 }
 0x321   : > { %v1075_v37 = vpop.f32.mrb[64].mxu0  ;;  %v1146_v38 = vpop.f32.mrb[64].mxu1 }
 0x322   : > { %v1316_v39 = vmul.f32 -1.442695, %v1075_v37  ;;  %v1318_v40 = vmul.f32 -1.442695, %v1146_v38  ;;  %v1077_v41 = vpop.f32.mrb[65].mxu0  ;;  %v1148_v42 = vpop.f32.mrb[65].mxu1 }
 0x323   : > { %v1317_v43 = vmul.f32 -1.442695, %v1077_v41  ;;  %v1319_v44 = vmul.f32 -1.442695, %v1148_v42 }
 0x324   : > { %1435 = vpow2.f32 %v1316_v39 }
 0x325   : > { %1437 = vpow2.f32 %v1318_v40 }
 0x326   : > { %1439 = vpow2.f32 %v1317_v43 }
 0x327   : > { %1441 = vpow2.f32 %v1319_v44 }
 0x32e   : > { %v1436_v45 = vpop.eup %1435 }
 0x32f   : > { %v1438_v46 = vpop.eup %1437  ;;  %v1163_v48 = vadd.f32 1.0, %v1436_v45 }
 0x330   : > { %v1440_v49 = vpop.eup %1439  ;;  %v1165_v50 = vadd.f32 1.0, %v1438_v46 }
 0x331   : > { %v1442_v51 = vpop.eup %1441  ;;  %1443 = vrcp.f32 %v1163_v48  ;;  %v1164_v52 = vadd.f32 1.0, %v1440_v49 }
 0x332   : > { %1445 = vrcp.f32 %v1165_v50  ;;  %v1166_v53 = vadd.f32 1.0, %v1442_v51 }
 0x333   : > { %1447 = vrcp.f32 %v1164_v52 }
 0x334   : > { %1449 = vrcp.f32 %v1166_v53 }
 0x33b   : > { %v1444_v56 = vpop.eup %1443 }
 0x33c   : > { %v1446_v58 = vpop.eup %1445  ;;  %v1195_v62 = vsel %vm1194_vm1, %v1444_v56, 0.0 }
 0x33d   : > { %v1448_v4 = vpop.eup %1447  ;;  %v1199_v2 = vsel %vm1177_vm2, %v1181_v57, %v1195_v62  ;;  %v1197_v3 = vsel %vm1194_vm1, %v1446_v58, 0.0 }
 0x33e   : > { %v1450_v5 = vpop.eup %1449  ;;  %1203 = vst [vmem:[%s224_s27] sm:$0xff] %v1199_v2  ;;  %v1201_v60 = vsel %vm1177_vm2, %v1189_v59, %v1197_v3  ;;  %v1196_v7 = vsel %vm1194_vm1, %v1448_v4, 0.0 }
 0x33f   : > { %v1200_v8 = vsel %vm1177_vm2, %v1185_v1, %v1196_v7  ;;  %v1198_v61 = vsel %vm1194_vm1, %v1450_v5, 0.0  ;;  %1205 = vst [vmem:[%s224_s27 + $0x10] sm:$0xff] %v1201_v60 }
 0x340   : > { %1204 = vst [vmem:[%s224_s27 + $0x8] sm:$0xff] %v1200_v8  ;;  %v1202_v9 = vsel %vm1177_vm2, %v1193_v6, %v1198_v61 }
 0x341   : > { %1206 = vst [vmem:[%s224_s27 + $0x18] sm:$0xff] %v1202_v9 }
 0x342 PF: > { %p11_p9 = scmp.ge.s32.totalorder %s1519_s19, 4   ;;  %s1682_s15 = smov %s1469_s16 }
 0x343   : > { %s1683_s16 = smov %s1528_s22  ;;  %s1684_s17 = smov %s1519_s19 }
 0x344   :  { %13 = sbr.rel (!%p11_p9) target bundleno = 2 (0x2), region = 94 }

</bundles_post_ra>
